<compile_context>
chip_gen: v7x
topology: tpu7x:2x2x1
jax: 0.10.0
libtpu: 0.0.40
codegen_flags: <defaults>
</compile_context>

<pallas_src>
import functools

import jax
import jax.numpy as jnp
from jax.experimental import pallas as pl
from jax.experimental.pallas import tpu as pltpu


def _round_up(x: int, m: int) -> int:
    return ((x + m - 1) // m) * m


def _pick_tile(n_p: int, target: int) -> int:
    """Largest multiple of 128 that divides n_p and is <= target (>= 128)."""
    best = 128
    t = 128
    cap = min(target, n_p)
    while t <= cap:
        if n_p % t == 0:
            best = t
        t += 128
    return best


# ---------------------------------------------------------------------------
# Kernels
# ---------------------------------------------------------------------------
def _glconv_fuse_w_kernel(adj_ref, x_ref, w_ref, b_ref, o_ref, acc_ref, *,
                          x_resident: bool, tk: int):
    """Accumulate (adj @ X) over K tiles into f32 scratch; @W + bias + ReLU once.

    Used when f_in <= f_out (the big N*N reduction runs against the narrower
    feature dim); W stays VMEM-resident (constant block index).
    """
    k = pl.program_id(1)

    if x_resident:
        start = pl.multiple_of(k * tk, 128)
        x_blk = x_ref[pl.ds(start, tk), :]
    else:
        x_blk = x_ref[...]

    contrib = jnp.dot(adj_ref[...], x_blk, preferred_element_type=jnp.float32)

    @pl.when(k == 0)
    def _first():
        acc_ref[...] = contrib

    @pl.when(k > 0)
    def _rest():
        acc_ref[...] += contrib

    @pl.when(k == pl.num_programs(1) - 1)
    def _finalize():
        out = jnp.dot(acc_ref[...].astype(w_ref.dtype), w_ref[...],
                      preferred_element_type=jnp.float32)
        o_ref[...] = jnp.maximum(out + b_ref[...], 0.0).astype(o_ref.dtype)


def _glconv_pre_w_kernel(adj_ref, xw_ref, b_ref, o_ref, *,
                         x_resident: bool, tk: int):
    """X @ W hoisted to the wrapper; accumulate adj @ (XW) directly into the
    f32 output block (constant over K -> VMEM-resident); bias + ReLU at end."""
    k = pl.program_id(1)

    if x_resident:
        start = pl.multiple_of(k * tk, 128)
        xw_blk = xw_ref[pl.ds(start, tk), :]
    else:
        xw_blk = xw_ref[...]

    contrib = jnp.dot(adj_ref[...], xw_blk, preferred_element_type=jnp.float32)

    @pl.when(k == 0)
    def _first():
        o_ref[...] = contrib

    @pl.when(k > 0)
    def _rest():
        o_ref[...] += contrib

    @pl.when(k == pl.num_programs(1) - 1)
    def _finalize():
        o_ref[...] = jnp.maximum(o_ref[...] + b_ref[...], 0.0)


# ---------------------------------------------------------------------------
# Wrapper
# ---------------------------------------------------------------------------
def prepare_adj(adj, compute_dtype=jnp.bfloat16):
    """Pad adjacency to (n_p, n_p) with n_p = round_up(N, 128) and cast once.

    The adjacency is static across layers/iterations in a GCN: prepare it once
    outside the hot path and pass the result to glconv_forward (which detects
    it is already prepared and skips the pad/cast)."""
    N = adj.shape[0]
    n_p = _round_up(N, 128)
    if adj.shape == (n_p, n_p) and adj.dtype == jnp.dtype(compute_dtype):
        return adj
    return jnp.pad(adj, ((0, n_p - N), (0, n_p - N))).astype(compute_dtype)


def glconv_forward(X, adj, W, bias, *, compute_dtype=jnp.bfloat16,
                   tm_target=256, tk_target=2048,
                   x_resident_bytes=8 * 1024 * 1024):
    """out = relu(adj @ X @ W + bias); dropout is the eval-mode identity.

    `adj` may be the raw (N, N) adjacency or the result of prepare_adj()."""
    N, f_in = X.shape
    f_out = W.shape[1]
    f32 = jnp.float32

    # ---- padding: N / features to multiples of 128 only --------------------
    n_p = _round_up(N, 128)
    fi_p = _round_up(f_in, 128)
    fo_p = _round_up(f_out, 128)

    adj_p = prepare_adj(adj, compute_dtype)  # no-op if already prepared

    # ---- tile sizing --------------------------------------------------------
    # tm bounds the acc/out block; prefer >= 2 row tiles (v7x megacore).
    tm = _pick_tile(n_p, min(tm_target, max(128, n_p // 2)))
    tk = _pick_tile(n_p, tk_target)
    grid = (n_p // tm, n_p // tk)  # (row tiles [parallel], K [arbitrary])

    bias2d = jnp.pad(bias.astype(f32).reshape(1, f_out),
                     ((0, 0), (0, fo_p - f_out)))

    compiler_params = pltpu.CompilerParams(
        dimension_semantics=("parallel", "arbitrary"),
        vmem_limit_bytes=48 * 1024 * 1024,
    )

    fuse_w = f_in <= f_out
    if fuse_w:
        # keep adj @ X first; fold @W into the once-per-row-tile epilogue
        x_p = jnp.pad(X, ((0, n_p - N), (0, fi_p - f_in))).astype(compute_dtype)
        f_stream = fi_p
    else:
        # f_in > f_out: hoist X @ W to plain XLA (only N*f_in*f_out flops) and
        # stream the narrower XW through the kernel instead.
        xw = jnp.dot(X, W, preferred_element_type=f32)
        x_p = jnp.pad(xw, ((0, n_p - N), (0, fo_p - f_out))).astype(compute_dtype)
        f_stream = fo_p

    # make X / XW fully resident when small: constant index_map -> fetched once
    x_bytes = n_p * f_stream * jnp.dtype(compute_dtype).itemsize
    x_resident = x_bytes <= x_resident_bytes
    if x_resident:
        x_spec = pl.BlockSpec((n_p, f_stream), lambda i, k: (0, 0))
    else:
        x_spec = pl.BlockSpec((tk, f_stream), lambda i, k: (k, 0))

    adj_spec = pl.BlockSpec((tm, tk), lambda i, k: (i, k))
    bias_spec = pl.BlockSpec((1, fo_p), lambda i, k: (0, 0))
    out_spec = pl.BlockSpec((tm, fo_p), lambda i, k: (i, 0))

    if fuse_w:
        w_p = jnp.pad(W, ((0, fi_p - f_in), (0, fo_p - f_out))).astype(compute_dtype)
        kernel = functools.partial(_glconv_fuse_w_kernel,
                                   x_resident=x_resident, tk=tk)
        out_p = pl.pallas_call(
            kernel,
            out_shape=jax.ShapeDtypeStruct((n_p, fo_p), f32),
            grid_spec=pltpu.PrefetchScalarGridSpec(
                num_scalar_prefetch=0,
                grid=grid,
                in_specs=[
                    adj_spec,                                         # adj tile
                    x_spec,                                           # X
                    pl.BlockSpec((fi_p, fo_p), lambda i, k: (0, 0)),  # W resident
                    bias_spec,                                        # bias
                ],
                out_specs=out_spec,
                scratch_shapes=[pltpu.VMEM((tm, fi_p), f32)],
            ),
            compiler_params=compiler_params,
        )(adj_p, x_p, w_p, bias2d)
    else:
        kernel = functools.partial(_glconv_pre_w_kernel,
                                   x_resident=x_resident, tk=tk)
        out_p = pl.pallas_call(
            kernel,
            out_shape=jax.ShapeDtypeStruct((n_p, fo_p), f32),
            grid_spec=pltpu.PrefetchScalarGridSpec(
                num_scalar_prefetch=0,
                grid=grid,
                in_specs=[adj_spec, x_spec, bias_spec],
                out_specs=out_spec,
                # no scratch: the f32 output block (constant over k) is the accumulator
            ),
            compiler_params=compiler_params,
        )(adj_p, x_p, bias2d)

    return out_p[:N, :f_out]


if __name__ == "__main__":
    # ---- case 1: f_in < f_out (fused-W path), adj prepared once -------------
    N, in_channels, out_channels = 16, 8, 32
    key = jax.random.PRNGKey(0)
    k_x, k_adj, k_w, k_b = jax.random.split(key, 4)

    X = jax.random.normal(k_x, (N, in_channels), dtype=jnp.float32)
    A = jax.random.uniform(k_adj, (N, N), dtype=jnp.float32)
    adj = (A + A.T) / (2.0 * N)                      # normalized adjacency-like
    W = jax.random.uniform(k_w, (in_channels, out_channels), dtype=jnp.float32)
    bias = jax.random.uniform(k_b, (out_channels,), dtype=jnp.float32)

    ref = jnp.maximum(adj @ X @ W + bias[None, :], 0.0)

    # exact-precision path (f32 streamed) — strict numerical check
    adj_f32 = prepare_adj(adj, jnp.float32)          # hoisted pad/cast (reused)
    out_f32 = jax.block_until_ready(
        glconv_forward(X, adj_f32, W, bias, compute_dtype=jnp.float32))
    assert out_f32.shape == (N, out_channels)
    assert jnp.allclose(out_f32, ref, atol=1e-5, rtol=1e-5)

    # default fast path (bf16-streamed, f32 accumulate) — loose check
    adj_bf16 = prepare_adj(adj, jnp.bfloat16)        # hoisted pad/cast (reused)
    out_bf16 = jax.block_until_ready(glconv_forward(X, adj_bf16, W, bias))
    assert out_bf16.shape == (N, out_channels)
    assert jnp.allclose(out_bf16, ref, atol=2e-2, rtol=2e-2)

    # ---- case 2: f_in > f_out (hoisted X@W path) + non-aligned N ------------
    N2, f_in2, f_out2 = 20, 32, 8
    k_x2, k_adj2, k_w2, k_b2 = jax.random.split(jax.random.PRNGKey(1), 4)
    X2 = jax.random.normal(k_x2, (N2, f_in2), dtype=jnp.float32)
    A2 = jax.random.uniform(k_adj2, (N2, N2), dtype=jnp.float32)
    adj2 = (A2 + A2.T) / (2.0 * N2)
    W2 = jax.random.uniform(k_w2, (f_in2, f_out2), dtype=jnp.float32)
    b2 = jax.random.uniform(k_b2, (f_out2,), dtype=jnp.float32)
    ref2 = jnp.maximum(adj2 @ X2 @ W2 + b2[None, :], 0.0)

    out2 = jax.block_until_ready(
        glconv_forward(X2, adj2, W2, b2, compute_dtype=jnp.float32))
    assert out2.shape == (N2, f_out2)
    assert jnp.allclose(out2, ref2, atol=1e-4, rtol=1e-4)

    # ---- case 3: multi-row-tile + multi-K grid; resident and streamed X -----
    N3, f_in3, f_out3 = 256, 16, 64
    k_x3, k_adj3, k_w3, k_b3 = jax.random.split(jax.random.PRNGKey(2), 4)
    X3 = jax.random.normal(k_x3, (N3, f_in3), dtype=jnp.float32)
    A3 = jax.random.uniform(k_adj3, (N3, N3), dtype=jnp.float32)
    adj3 = (A3 + A3.T) / (2.0 * N3)
    W3 = jax.random.uniform(k_w3, (f_in3, f_out3), dtype=jnp.float32)
    b3 = jax.random.uniform(k_b3, (f_out3,), dtype=jnp.float32)
    ref3 = jnp.maximum(adj3 @ X3 @ W3 + b3[None, :], 0.0)

    # (a) resident X, K split into 2 tiles (exercises in-kernel dynamic slice)
    out3a = jax.block_until_ready(
        glconv_forward(X3, adj3, W3, b3, tk_target=128))
    assert out3a.shape == (N3, f_out3)
    assert jnp.allclose(out3a, ref3, atol=2e-2, rtol=2e-2)

    # (b) streamed X per K tile (force non-resident path)
    out3b = jax.block_until_ready(
        glconv_forward(X3, adj3, W3, b3, tk_target=128, x_resident_bytes=0))
    assert out3b.shape == (N3, f_out3)
    assert jnp.allclose(out3b, ref3, atol=2e-2, rtol=2e-2)

    print("KERNEL_OK")
</pallas_src>

<mosaic_0001>
module attributes {stable_mosaic.version = 11 : i64} {
  func.func @_glconv_fuse_w_kernel(%arg0: i32, %arg1: i32, %arg2: memref<128x128xf32, #tpu.memory_space<vmem>>, %arg3: memref<128x128xf32, #tpu.memory_space<vmem>>, %arg4: memref<128x128xf32, #tpu.memory_space<vmem>>, %arg5: memref<1x128xf32, #tpu.memory_space<vmem>>, %arg6: memref<128x128xf32, #tpu.memory_space<vmem>>, %arg7: memref<128x128xf32, #tpu.memory_space<vmem>>) attributes {dimension_semantics = [#tpu.dimension_semantics<parallel>, #tpu.dimension_semantics<arbitrary>], iteration_bounds = array<i64: 1, 1>, scalar_prefetch = 0 : i64, scratch_operands = 1 : i64, tpu.core_type = #tpu.core_type<tc>, window_params = [{transform_indices = @transform_0, window_bounds = array<i64: 128, 128>}, {pipeline_mode = #tpu.pipeline_mode<synchronous>, transform_indices = @transform_1, window_bounds = array<i64: 128, 128>}, {pipeline_mode = #tpu.pipeline_mode<synchronous>, transform_indices = @transform_2, window_bounds = array<i64: 128, 128>}, {pipeline_mode = #tpu.pipeline_mode<synchronous>, transform_indices = @transform_3, window_bounds = array<i64: 1, 128>}, {transform_indices = @transform_4, window_bounds = array<i64: 128, 128>}]} {
    %c128_i32 = arith.constant 128 : i32
    %0 = arith.muli %arg1, %c128_i32 : i32
    %1 = tpu.assume_multiple %0, 128 : i32
    %2 = arith.index_cast %1 : i32 to index
    %c0 = arith.constant 0 : index
    %3 = vector.load %arg3[%2, %c0] : memref<128x128xf32, #tpu.memory_space<vmem>>, vector<128x128xf32>
    %c0_0 = arith.constant 0 : index
    %c0_1 = arith.constant 0 : index
    %4 = vector.load %arg2[%c0_0, %c0_1] : memref<128x128xf32, #tpu.memory_space<vmem>>, vector<128x128xf32>
    %cst = arith.constant dense<0.000000e+00> : vector<128x128xf32>
    %5 = tpu.matmul %4, %3, %cst {dimension_numbers = #tpu.dot_dimension_numbers<[1], [0], [0], [1], [0, 0, 1, 1], [], []>} : vector<128x128xf32>, vector<128x128xf32>, vector<128x128xf32> -> vector<128x128xf32>
    %c0_i32 = arith.constant 0 : i32
    %6 = arith.cmpi eq, %arg1, %c0_i32 : i32
    %7 = arith.extui %6 : i1 to i32
    %c0_i32_2 = arith.constant 0 : i32
    %8 = arith.cmpi ne, %7, %c0_i32_2 : i32
    scf.if %8 {
      %c0_7 = arith.constant 0 : index
      %c0_8 = arith.constant 0 : index
      %15 = vector.load %arg7[%c0_7, %c0_8] : memref<128x128xf32, #tpu.memory_space<vmem>>, vector<128x128xf32>
      tpu.vector_store %arg7[%c0_7, %c0_8], %5 {strides = array<i32>} : memref<128x128xf32, #tpu.memory_space<vmem>>, vector<128x128xf32>,
    } else {
    }
    %c0_i32_3 = arith.constant 0 : i32
    %9 = arith.cmpi sgt, %arg1, %c0_i32_3 : i32
    %10 = arith.extui %9 : i1 to i32
    %c0_i32_4 = arith.constant 0 : i32
    %11 = arith.cmpi ne, %10, %c0_i32_4 : i32
    scf.if %11 {
      %c0_7 = arith.constant 0 : index
      %c0_8 = arith.constant 0 : index
      %15 = vector.load %arg7[%c0_7, %c0_8] : memref<128x128xf32, #tpu.memory_space<vmem>>, vector<128x128xf32>
      %16 = arith.addf %15, %5 : vector<128x128xf32>
      %c0_9 = arith.constant 0 : index
      %c0_10 = arith.constant 0 : index
      %17 = vector.load %arg7[%c0_9, %c0_10] : memref<128x128xf32, #tpu.memory_space<vmem>>, vector<128x128xf32>
      tpu.vector_store %arg7[%c0_9, %c0_10], %16 {strides = array<i32>} : memref<128x128xf32, #tpu.memory_space<vmem>>, vector<128x128xf32>,
    } else {
    }
    %c0_i32_5 = arith.constant 0 : i32
    %12 = arith.cmpi eq, %arg1, %c0_i32_5 : i32
    %13 = arith.extui %12 : i1 to i32
    %c0_i32_6 = arith.constant 0 : i32
    %14 = arith.cmpi ne, %13, %c0_i32_6 : i32
    scf.if %14 {
      %c0_7 = arith.constant 0 : index
      %c0_8 = arith.constant 0 : index
      %15 = vector.load %arg7[%c0_7, %c0_8] : memref<128x128xf32, #tpu.memory_space<vmem>>, vector<128x128xf32>
      %c0_9 = arith.constant 0 : index
      %c0_10 = arith.constant 0 : index
      %16 = vector.load %arg4[%c0_9, %c0_10] : memref<128x128xf32, #tpu.memory_space<vmem>>, vector<128x128xf32>
      %cst_11 = arith.constant dense<0.000000e+00> : vector<128x128xf32>
      %17 = tpu.matmul %15, %16, %cst_11 {dimension_numbers = #tpu.dot_dimension_numbers<[1], [0], [0], [1], [0, 0, 1, 1], [], []>} : vector<128x128xf32>, vector<128x128xf32>, vector<128x128xf32> -> vector<128x128xf32>
      %c0_12 = arith.constant 0 : index
      %c0_13 = arith.constant 0 : index
      %18 = vector.load %arg5[%c0_12, %c0_13] : memref<1x128xf32, #tpu.memory_space<vmem>>, vector<1x128xf32>
      %19 = vector.broadcast %18 : vector<1x128xf32> to vector<128x128xf32>
      %20 = arith.addf %17, %19 : vector<128x128xf32>
      %cst_14 = arith.constant 0.000000e+00 : f32
      %21 = vector.broadcast %cst_14 : f32 to vector<128x128xf32>
      %22 = arith.maximumf %20, %21 : vector<128x128xf32>
      %c0_15 = arith.constant 0 : index
      %c0_16 = arith.constant 0 : index
      %23 = vector.load %arg6[%c0_15, %c0_16] : memref<128x128xf32, #tpu.memory_space<vmem>>, vector<128x128xf32>
      tpu.vector_store %arg6[%c0_15, %c0_16], %22 {strides = array<i32>} : memref<128x128xf32, #tpu.memory_space<vmem>>, vector<128x128xf32>,
    } else {
    }
    return
  }
  func.func @transform_0(%arg0: i32, %arg1: i32) -> (i32, i32) {
    %c0_i32 = arith.constant 0 : i32
    return %arg0, %arg1 : i32, i32
  }
  func.func @transform_1(%arg0: i32, %arg1: i32) -> (i32, i32) {
    %c0_i32 = arith.constant 0 : i32
    %c0_i32_0 = arith.constant 0 : i32
    %c0_i32_1 = arith.constant 0 : i32
    return %c0_i32, %c0_i32_0 : i32, i32
  }
  func.func @transform_2(%arg0: i32, %arg1: i32) -> (i32, i32) {
    %c0_i32 = arith.constant 0 : i32
    %c0_i32_0 = arith.constant 0 : i32
    %c0_i32_1 = arith.constant 0 : i32
    return %c0_i32, %c0_i32_0 : i32, i32
  }
  func.func @transform_3(%arg0: i32, %arg1: i32) -> (i32, i32) {
    %c0_i32 = arith.constant 0 : i32
    %c0_i32_0 = arith.constant 0 : i32
    %c0_i32_1 = arith.constant 0 : i32
    return %c0_i32, %c0_i32_0 : i32, i32
  }
  func.func @transform_4(%arg0: i32, %arg1: i32) -> (i32, i32) {
    %c0_i32 = arith.constant 0 : i32
    %c0_i32_0 = arith.constant 0 : i32
    return %arg0, %c0_i32 : i32, i32
  }
}

</mosaic_0001>

<bundles_post_ra>
// kernel: tpu_custom_call.1
= control target key start
LH: loop header
LB: loop body
LE: loop exit
PB: predicated region body
PF: predicated region fallthrough
CT: control target
= control target key end

     0   :  { %9 = vsyncpa [#allocation4], 0  ;;  %s989_s0 = inlined_call_operand.hbm [shape: f32[128,128], index: 0, kind: input, shape index: {}]   ;;  %s990_s1 = inlined_call_operand.hbm [shape: f32[128,128], index: 1, kind: input, shape index: {}]   ;;  %s991_s2 = inlined_call_operand.hbm [shape: f32[128,128], index: 2, kind: input, shape index: {}]   ;;  %s992_s3 = inlined_call_operand.vmem [shape: f32[1,128], index: 3, kind: input, shape index: {}]   ;;  %s993_s4 = inlined_call_operand.hbm [shape: f32[128,128], index: 4, kind: output, shape index: {}]  }
   0x1   :  { %10 = vsyncpa [#allocation7], 0 }
   0x2   :  { %11 = vsyncpa [#allocation5], 0  ;;  %s888_s15 = smov [#allocation6]   ;;  %s889_s17 = smov [#allocation3]  }
   0x3   :  { %s29_s16 = sshll.u32 %s888_s15, 4  ;;  %s17_s18 = sshll.u32 %s889_s17, 4  ;;  %s30_s16 = int_to_ptr.vmem [resolvable:$true] %s29_s16  ;;  %s919_s18 = int_to_ptr.vmem [resolvable:$true] %s17_s18 }
   0x4   :  { %s794_s21 = scalar_lea.hbm %s990_s1, 2048 }
   0x5   :  { %p795_p0 = scmp.ne.s32.totalorder %s990_s1, %s794_s21  ;;  %p798_p1 = scmp.lt.u32.totalorder %s794_s21, %s990_s1 }
   0x7   :  { %p800_p2 = pnand %p798_p1, %p795_p0 }
   0x9   :  { %803 = shalt.err (!%p800_p2)
}
   0xa   :  { %s804_s26 = scalar_lea.vmem %s30_s16, 2048  ;;  %p809_p4 = scmp.lt.s32.totalorder %s30_s16, %s30_s16 }
   0xb   :  { %p805_p3 = scmp.ne.s32.totalorder %s30_s16, %s804_s26  ;;  %p810_p5 = scmp.lt.s32.totalorder %s804_s26, %s804_s26 }
   0xd   :  { %p811_p6 = por %p810_p5, %p809_p4 }
   0xf   :  { %p812_p7 = pnand %p811_p6, %p805_p3 }
  0x11   :  { %815 = shalt.err (!%p812_p7)
}
  0x12   :  { %s890_s27 = smov 128   ;;  %s891_s28 = smov 8  }
  0x13   :  { %35 = dma.hbm_to_vmem [thread:$0]  %s990_s1, 2048, %s30_s16, [#allocation7], %s890_s27, %s890_s27, %s891_s28  }
  0x14   :  { %s816_s7 = scalar_lea.hbm %s989_s0, 2048 }
  0x15   :  { %p817_p8 = scmp.ne.s32.totalorder %s989_s0, %s816_s7  ;;  %p820_p9 = scmp.lt.u32.totalorder %s816_s7, %s989_s0 }
  0x17   :  { %p822_p10 = pnand %p820_p9, %p817_p8 }
  0x19   :  { %825 = shalt.err (!%p822_p10)
}
  0x1a   :  { %s826_s12 = scalar_lea.vmem %s919_s18, 2048  ;;  %p831_p12 = scmp.lt.s32.totalorder %s919_s18, %s919_s18 }
  0x1b   :  { %p827_p11 = scmp.ne.s32.totalorder %s919_s18, %s826_s12  ;;  %p832_p13 = scmp.lt.s32.totalorder %s826_s12, %s826_s12 }
  0x1d   :  { %p833_p0 = por %p832_p13, %p831_p12 }
  0x1f   :  { %p834_p1 = pnand %p833_p0, %p827_p11 }
  0x21   :  { %837 = shalt.err (!%p834_p1)
}
  0x22   :  { %23 = dma.hbm_to_vmem [thread:$0]  %s989_s0, 2048, %s919_s18, [#allocation4], %s890_s27, %s890_s27, %s891_s28  }
  0x23   :  { %s892_s14 = smov [#allocation8]   ;;  %s838_s19 = scalar_lea.hbm %s991_s2, 2048 }
  0x24   :  { %s41_s15 = sshll.u32 %s892_s14, 4  ;;  %p839_p2 = scmp.ne.s32.totalorder %s991_s2, %s838_s19  ;;  %s42_s15 = int_to_ptr.vmem [resolvable:$true] %s41_s15 }
  0x25   :  { %p842_p3 = scmp.lt.u32.totalorder %s838_s19, %s991_s2 }
  0x27   :  { %p844_p4 = pnand %p842_p3, %p839_p2 }
  0x29   :  { %847 = shalt.err (!%p844_p4)
}
  0x2a   :  { %s848_s24 = scalar_lea.vmem %s42_s15, 2048  ;;  %p853_p6 = scmp.lt.s32.totalorder %s42_s15, %s42_s15 }
  0x2b   :  { %p849_p5 = scmp.ne.s32.totalorder %s42_s15, %s848_s24  ;;  %p854_p7 = scmp.lt.s32.totalorder %s848_s24, %s848_s24 }
  0x2d   :  { %p855_p8 = por %p854_p7, %p853_p6 }
  0x2f   :  { %p856_p9 = pnand %p855_p8, %p849_p5 }
  0x31   :  { %859 = shalt.err (!%p856_p9)
}
  0x32   :  { %47 = dma.hbm_to_vmem [thread:$0]  %s991_s2, 2048, %s42_s15, [#allocation7], %s890_s27, %s890_s27, %s891_s28  }
  0x33   :  { %882 = dma.done.wait [#allocation4], 2048  }
  0x34   :  { %883 = vsyncadd [#allocation4], 4294965248 }
  0x35   :  { %884 = dma.done.wait [#allocation7], 4096  }
  0x36   :  { %885 = vsyncadd [#allocation7], 4294963200  ;;  %v61_v0 = vld [vmem:[#allocation6] sm:$0xff]  ;;  %v62_v1 = vld [vmem:[#allocation6 + $0x8] sm:$0xff] }
  0x37   :  { %v63_v2 = vld [vmem:[#allocation6 + $0x10] sm:$0xff]  ;;  %v724_v3 = vpack.c.bf16 %v62_v1, %v61_v0  ;;  %v64_v4 = vld [vmem:[#allocation6 + $0x18] sm:$0xff]  ;;  %v65_v6 = vld [vmem:[#allocation6 + $0x20] sm:$0xff] }
  0x38   :  { %v728_v5 = vpack.c.bf16 %v64_v4, %v63_v2  ;;  %v66_v7 = vld [vmem:[#allocation6 + $0x28] sm:$0xff]  ;;  %v77_v9 = vld [vmem:[#allocation3] sm:$0xff]  ;;  %v67_v10 = vld [vmem:[#allocation6 + $0x30] sm:$0xff] }
  0x39   :  { %725 = vmatprep.subr.bf16.mxu0 %v724_v3  ;;  %v732_v8 = vpack.c.bf16 %v66_v7, %v65_v6  ;;  %v68_v11 = vld [vmem:[#allocation6 + $0x38] sm:$0xff]  ;;  %644 = vmatprep.mubr.f32.mxu0 %v77_v9  ;;  %v69_v13 = vld [vmem:[#allocation6 + $0x40] sm:$0xff]  ;;  %v70_v14 = vld [vmem:[#allocation6 + $0x48] sm:$0xff] }
  0x3a   :  { %727 = vmatpush3.bf16.msra.mxu0 %v724_v3  ;;  %v736_v12 = vpack.c.bf16 %v68_v11, %v67_v10  ;;  %v329_v15 = vld [vmem:[#allocation8] sm:$0xff]  ;;  %v330_v16 = vld [vmem:[#allocation8 + $0x8] sm:$0xff]  ;;  %v331_v17 = vld [vmem:[#allocation8 + $0x10] sm:$0xff]  ;;  %v740_v21 = vpack.c.bf16 %v70_v14, %v69_v13 }
  0x3b   :  { %729 = vmatprep.subr.bf16.mxu0 %v728_v5  ;;  %v332_v18 = vld [vmem:[#allocation8 + $0x18] sm:$0xff]  ;;  %v756_v19 = vpack.c.bf16 %v330_v16, %v329_v15  ;;  %v333_v22 = vld [vmem:[#allocation8 + $0x20] sm:$0xff]  ;;  %v334_v23 = vld [vmem:[#allocation8 + $0x28] sm:$0xff] }
  0x3c   :  { %v760_v20 = vpack.c.bf16 %v332_v18, %v331_v17  ;;  %v71_v24 = vld [vmem:[#allocation6 + $0x50] sm:$0xff]  ;;  %v72_v25 = vld [vmem:[#allocation6 + $0x58] sm:$0xff]  ;;  %v764_v26 = vpack.c.bf16 %v334_v23, %v333_v22  ;;  %v73_v30 = vld [vmem:[#allocation6 + $0x60] sm:$0xff] }
  0x3d   :  { %757 = vmatprep.subr.bf16.mxu1 %v756_v19  ;;  %v744_v27 = vpack.c.bf16 %v72_v25, %v71_v24  ;;  %v335_v28 = vld [vmem:[#allocation8 + $0x30] sm:$0xff]  ;;  %v336_v29 = vld [vmem:[#allocation8 + $0x38] sm:$0xff]  ;;  %v74_v31 = vld [vmem:[#allocation6 + $0x68] sm:$0xff] }
  0x3e   :  { %731 = vmatpush3.bf16.msra.mxu0 %v728_v5  ;;  %759 = vmatpush3.bf16.msra.mxu1 %v756_v19  ;;  %v768_v32 = vpack.c.bf16 %v336_v29, %v335_v28  ;;  %v748_v33 = vpack.c.bf16 %v74_v31, %v73_v30  ;;  %v337_v34 = vld [vmem:[#allocation8 + $0x40] sm:$0xff]  ;;  %v338_v35 = vld [vmem:[#allocation8 + $0x48] sm:$0xff]  ;;  %v75_v36 = vld [vmem:[#allocation6 + $0x70] sm:$0xff] }
  0x3f   :  { %733 = vmatprep.subr.bf16.mxu0 %v732_v8  ;;  %761 = vmatprep.subr.bf16.mxu1 %v760_v20  ;;  %v76_v37 = vld [vmem:[#allocation6 + $0x78] sm:$0xff]  ;;  %v772_v38 = vpack.c.bf16 %v338_v35, %v337_v34  ;;  %v339_v40 = vld [vmem:[#allocation8 + $0x50] sm:$0xff]  ;;  %v341_v43 = vld [vmem:[#allocation8 + $0x60] sm:$0xff] }
  0x40   :  { %v752_v39 = vpack.c.bf16 %v76_v37, %v75_v36  ;;  %v340_v41 = vld [vmem:[#allocation8 + $0x58] sm:$0xff]  ;;  %v342_v44 = vld [vmem:[#allocation8 + $0x68] sm:$0xff]  ;;  %v79_v47 = vld [vmem:[#allocation3 + $0x10] sm:$0xff] }
  0x41   :  { %v776_v42 = vpack.c.bf16 %v340_v41, %v339_v40  ;;  %v78_v45 = vld [vmem:[#allocation3 + $0x8] sm:$0xff]  ;;  %v780_v46 = vpack.c.bf16 %v342_v44, %v341_v43  ;;  %v343_v48 = vld [vmem:[#allocation8 + $0x70] sm:$0xff]  ;;  %v344_v49 = vld [vmem:[#allocation8 + $0x78] sm:$0xff] }
  0x42   :  { %735 = vmatpush3.bf16.msra.mxu0 %v732_v8  ;;  %763 = vmatpush3.bf16.msra.mxu1 %v760_v20  ;;  %v80_v50 = vld [vmem:[#allocation3 + $0x18] sm:$0xff]  ;;  %v784_v51 = vpack.c.bf16 %v344_v49, %v343_v48  ;;  %v81_v52 = vld [vmem:[#allocation3 + $0x20] sm:$0xff]  ;;  %v82_v53 = vld [vmem:[#allocation3 + $0x28] sm:$0xff] }
  0x43   :  { %737 = vmatprep.subr.bf16.mxu0 %v736_v12  ;;  %765 = vmatprep.subr.bf16.mxu1 %v764_v26  ;;  %v83_v54 = vld [vmem:[#allocation3 + $0x30] sm:$0xff]  ;;  %v84_v55 = vld [vmem:[#allocation3 + $0x38] sm:$0xff]  ;;  %v85_v56 = vld [vmem:[#allocation3 + $0x40] sm:$0xff] }
  0x44   :  { %v86_v57 = vld [vmem:[#allocation3 + $0x48] sm:$0xff]  ;;  %v87_v58 = vld [vmem:[#allocation3 + $0x50] sm:$0xff]  ;;  %v88_v59 = vld [vmem:[#allocation3 + $0x58] sm:$0xff] }
  0x45   :  { %v89_v60 = vld [vmem:[#allocation3 + $0x60] sm:$0xff]  ;;  %v90_v61 = vld [vmem:[#allocation3 + $0x68] sm:$0xff]  ;;  %v91_v62 = vld [vmem:[#allocation3 + $0x70] sm:$0xff] }
  0x46   :  { %739 = vmatpush3.bf16.msra.mxu0 %v736_v12  ;;  %767 = vmatpush3.bf16.msra.mxu1 %v764_v26  ;;  %v92_v63 = vld [vmem:[#allocation3 + $0x78] sm:$0xff]  ;;  %v547_v16 = vld [vmem:[%s992_s3] ss:$0 sm:$0xff]  ;;  %s893_s3 = smov [#allocation9]  }
  0x47   :  { %741 = vmatprep.subr.bf16.mxu0 %v740_v21  ;;  %769 = vmatprep.subr.bf16.mxu1 %v768_v32  ;;  %s534_s26 = sshll.u32 %s893_s3, 4  ;;  %s535_s26 = int_to_ptr.vmem [resolvable:$true] %s534_s26 }
  0x48   :  { %s860_s29 = scalar_lea.vmem %s535_s26, 2048  ;;  %p865_p11 = scmp.lt.s32.totalorder %s535_s26, %s535_s26 }
  0x49   :  { %p861_p10 = scmp.ne.s32.totalorder %s535_s26, %s860_s29  ;;  %p866_p12 = scmp.lt.s32.totalorder %s860_s29, %s860_s29 }
  0x4a   :  { %743 = vmatpush3.bf16.msra.mxu0 %v740_v21  ;;  %771 = vmatpush3.bf16.msra.mxu1 %v768_v32 }
  0x4b   :  { %745 = vmatprep.subr.bf16.mxu0 %v744_v27  ;;  %773 = vmatprep.subr.bf16.mxu1 %v772_v38  ;;  %p867_p13 = por %p866_p12, %p865_p11 }
  0x4d   :  { %p868_p0 = pnand %p867_p13, %p861_p10 }
  0x4e   :  { %747 = vmatpush3.bf16.msra.mxu0 %v744_v27  ;;  %775 = vmatpush3.bf16.msra.mxu1 %v772_v38 }
  0x4f   :  { %749 = vmatprep.subr.bf16.mxu0 %v748_v33  ;;  %777 = vmatprep.subr.bf16.mxu1 %v776_v42 }
  0x52   :  { %751 = vmatpush3.bf16.msra.mxu0 %v748_v33  ;;  %779 = vmatpush3.bf16.msra.mxu1 %v776_v42 }
  0x53   :  { %753 = vmatprep.subr.bf16.mxu0 %v752_v39  ;;  %781 = vmatprep.subr.bf16.mxu1 %v780_v46 }
  0x56   :  { %755 = vmatpush3.bf16.msra.mxu0 %v752_v39  ;;  %783 = vmatpush3.bf16.msra.mxu1 %v780_v46 }
  0x57   :  { %785 = vmatprep.subr.bf16.mxu1 %v784_v51 }
  0x59   :  { %645 = vmatmul.mubr.f32.vlgmr.msra.gmra.mrb[0].mxu0 %v78_v45 }
  0x5a   :  { %647 = vmatprep.mubr.f32.mxu0 %v79_v47  ;;  %787 = vmatpush3.bf16.msra.mxu1 %v784_v51 }
  0x5d   :  { %648 = vmatmul.mubr.f32.gmra.mrb[2].mxu0 %v80_v50 }
  0x5e   :  { %650 = vmatprep.mubr.f32.mxu0 %v81_v52 }
  0x61   :  { %651 = vmatmul.mubr.f32.gmra.mrb[4].mxu0 %v82_v53 }
  0x62   :  { %653 = vmatprep.mubr.f32.mxu0 %v83_v54 }
  0x65   :  { %654 = vmatmul.mubr.f32.gmra.mrb[6].mxu0 %v84_v55 }
  0x66   :  { %656 = vmatprep.mubr.f32.mxu0 %v85_v56 }
  0x69   :  { %657 = vmatmul.mubr.f32.gmra.mrb[8].mxu0 %v86_v57 }
  0x6a   :  { %659 = vmatprep.mubr.f32.mxu0 %v87_v58 }
  0x6d   :  { %660 = vmatmul.mubr.f32.gmra.mrb[10].mxu0 %v88_v59 }
  0x6e   :  { %662 = vmatprep.mubr.f32.mxu0 %v89_v60 }
  0x71   :  { %663 = vmatmul.mubr.f32.gmra.mrb[12].mxu0 %v90_v61 }
  0x72   :  { %665 = vmatprep.mubr.f32.mxu0 %v91_v62 }
  0x75   :  { %666 = vmatmul.mubr.f32.gmra.mrb[14].mxu0 %v92_v63 }
 0x12c   :  { %v646_v0 = vpop.f32.mrb[0].mxu0 }
 0x12d   :  { %v159_v1 = vpop.f32.mrb[1].mxu0 }
 0x12e   :  { %700 = vmatprep.mubr.f32.mxu1 %v159_v1 }
 0x12f   :  { %701 = vmatmul.mubr.f32.vlgmr.msra.gmra.mrb[0].mxu1 %v646_v0 }
 0x130   :  { %v649_v2 = vpop.f32.mrb[2].mxu0 }
 0x131   :  { %v169_v3 = vpop.f32.mrb[3].mxu0 }
 0x132   :  { %703 = vmatprep.mubr.f32.mxu1 %v169_v3 }
 0x133   :  { %704 = vmatmul.mubr.f32.gmra.mrb[2].mxu1 %v649_v2 }
 0x134   :  { %v652_v4 = vpop.f32.mrb[4].mxu0 }
 0x135   :  { %v179_v5 = vpop.f32.mrb[5].mxu0 }
 0x136   :  { %706 = vmatprep.mubr.f32.mxu1 %v179_v5 }
 0x137   :  { %707 = vmatmul.mubr.f32.gmra.mrb[4].mxu1 %v652_v4 }
 0x138   :  { %v655_v6 = vpop.f32.mrb[6].mxu0 }
 0x139   :  { %v189_v7 = vpop.f32.mrb[7].mxu0 }
 0x13a   :  { %709 = vmatprep.mubr.f32.mxu1 %v189_v7 }
 0x13b   :  { %710 = vmatmul.mubr.f32.gmra.mrb[6].mxu1 %v655_v6 }
 0x13c   :  { %v658_v8 = vpop.f32.mrb[8].mxu0 }
 0x13d   :  { %v199_v9 = vpop.f32.mrb[9].mxu0 }
 0x13e   :  { %712 = vmatprep.mubr.f32.mxu1 %v199_v9 }
 0x13f   :  { %713 = vmatmul.mubr.f32.gmra.mrb[8].mxu1 %v658_v8 }
 0x140   :  { %v661_v10 = vpop.f32.mrb[10].mxu0 }
 0x141   :  { %v209_v11 = vpop.f32.mrb[11].mxu0 }
 0x142   :  { %715 = vmatprep.mubr.f32.mxu1 %v209_v11 }
 0x143   :  { %716 = vmatmul.mubr.f32.gmra.mrb[10].mxu1 %v661_v10 }
 0x144   :  { %v664_v12 = vpop.f32.mrb[12].mxu0 }
 0x145   :  { %v219_v13 = vpop.f32.mrb[13].mxu0 }
 0x146   :  { %718 = vmatprep.mubr.f32.mxu1 %v219_v13 }
 0x147   :  { %719 = vmatmul.mubr.f32.gmra.mrb[12].mxu1 %v664_v12 }
 0x148   :  { %v667_v14 = vpop.f32.mrb[14].mxu0 }
 0x149   :  { %v229_v15 = vpop.f32.mrb[15].mxu0 }
 0x14a   :  { %721 = vmatprep.mubr.f32.mxu1 %v229_v15 }
 0x14b   :  { %722 = vmatmul.mubr.f32.gmra.mrb[14].mxu1 %v667_v14 }
 0x202   :  { %v702_v17 = vpop.f32.mrb[0].mxu1 }
 0x203   :  { %v424_v18 = vadd.f32 %v702_v17, %v547_v16  ;;  %v418_v19 = vpop.f32.mrb[1].mxu1 }
 0x204   :  { %v419_v20 = vadd.f32 %v547_v16, %v418_v19 }
 0x205   :  { %v498_v21 = vmax.f32 %v424_v18, 0.0 }
 0x206   :  { %v497_v22 = vmax.f32 %v419_v20, 0.0  ;;  %v705_v23 = vpop.f32.mrb[2].mxu1 }
 0x207   :  { %514 = vst [vmem:[#allocation9 + $0x8] sm:$0xff] %v498_v21  ;;  %v434_v24 = vadd.f32 %v705_v23, %v547_v16  ;;  %v428_v25 = vpop.f32.mrb[3].mxu1 }
 0x208   :  { %513 = vst [vmem:[#allocation9] sm:$0xff] %v497_v22  ;;  %v429_v26 = vadd.f32 %v547_v16, %v428_v25 }
 0x209   :  { %v500_v27 = vmax.f32 %v434_v24, 0.0 }
 0x20a   :  { %v499_v28 = vmax.f32 %v429_v26, 0.0  ;;  %v708_v29 = vpop.f32.mrb[4].mxu1 }
 0x20b   :  { %516 = vst [vmem:[#allocation9 + $0x18] sm:$0xff] %v500_v27  ;;  %v444_v30 = vadd.f32 %v708_v29, %v547_v16  ;;  %v438_v31 = vpop.f32.mrb[5].mxu1 }
 0x20c   :  { %515 = vst [vmem:[#allocation9 + $0x10] sm:$0xff] %v499_v28  ;;  %v439_v32 = vadd.f32 %v547_v16, %v438_v31 }
 0x20d   :  { %v502_v33 = vmax.f32 %v444_v30, 0.0 }
 0x20e   :  { %v501_v34 = vmax.f32 %v439_v32, 0.0  ;;  %v711_v35 = vpop.f32.mrb[6].mxu1 }
 0x20f   :  { %518 = vst [vmem:[#allocation9 + $0x28] sm:$0xff] %v502_v33  ;;  %v454_v36 = vadd.f32 %v711_v35, %v547_v16  ;;  %v448_v37 = vpop.f32.mrb[7].mxu1 }
 0x210   :  { %517 = vst [vmem:[#allocation9 + $0x20] sm:$0xff] %v501_v34  ;;  %v449_v38 = vadd.f32 %v547_v16, %v448_v37 }
 0x211   :  { %v504_v39 = vmax.f32 %v454_v36, 0.0 }
 0x212   :  { %v503_v40 = vmax.f32 %v449_v38, 0.0  ;;  %v714_v41 = vpop.f32.mrb[8].mxu1 }
 0x213   :  { %520 = vst [vmem:[#allocation9 + $0x38] sm:$0xff] %v504_v39  ;;  %v464_v42 = vadd.f32 %v714_v41, %v547_v16  ;;  %v458_v43 = vpop.f32.mrb[9].mxu1 }
 0x214   :  { %519 = vst [vmem:[#allocation9 + $0x30] sm:$0xff] %v503_v40  ;;  %v459_v44 = vadd.f32 %v547_v16, %v458_v43 }
 0x215   :  { %v506_v45 = vmax.f32 %v464_v42, 0.0 }
 0x216   :  { %v505_v46 = vmax.f32 %v459_v44, 0.0  ;;  %v717_v47 = vpop.f32.mrb[10].mxu1 }
 0x217   :  { %522 = vst [vmem:[#allocation9 + $0x48] sm:$0xff] %v506_v45  ;;  %v474_v48 = vadd.f32 %v717_v47, %v547_v16  ;;  %v468_v49 = vpop.f32.mrb[11].mxu1 }
 0x218   :  { %521 = vst [vmem:[#allocation9 + $0x40] sm:$0xff] %v505_v46  ;;  %v469_v50 = vadd.f32 %v547_v16, %v468_v49 }
 0x219   :  { %v508_v51 = vmax.f32 %v474_v48, 0.0 }
 0x21a   :  { %v507_v52 = vmax.f32 %v469_v50, 0.0  ;;  %v720_v53 = vpop.f32.mrb[12].mxu1 }
 0x21b   :  { %524 = vst [vmem:[#allocation9 + $0x58] sm:$0xff] %v508_v51  ;;  %v484_v54 = vadd.f32 %v720_v53, %v547_v16  ;;  %v478_v55 = vpop.f32.mrb[13].mxu1 }
 0x21c   :  { %523 = vst [vmem:[#allocation9 + $0x50] sm:$0xff] %v507_v52  ;;  %v479_v56 = vadd.f32 %v547_v16, %v478_v55 }
 0x21d   :  { %v510_v57 = vmax.f32 %v484_v54, 0.0 }
 0x21e   :  { %v509_v58 = vmax.f32 %v479_v56, 0.0  ;;  %v723_v59 = vpop.f32.mrb[14].mxu1 }
 0x21f   :  { %526 = vst [vmem:[#allocation9 + $0x68] sm:$0xff] %v510_v57  ;;  %v494_v60 = vadd.f32 %v723_v59, %v547_v16  ;;  %v488_v61 = vpop.f32.mrb[15].mxu1 }
 0x220   :  { %525 = vst [vmem:[#allocation9 + $0x60] sm:$0xff] %v509_v58  ;;  %v489_v62 = vadd.f32 %v547_v16, %v488_v61 }
 0x221   :  { %v512_v63 = vmax.f32 %v494_v60, 0.0 }
 0x222   :  { %v511_v0 = vmax.f32 %v489_v62, 0.0 }
 0x223   :  { %528 = vst [vmem:[#allocation9 + $0x78] sm:$0xff] %v512_v63 }
 0x224   :  { %527 = vst [vmem:[#allocation9 + $0x70] sm:$0xff] %v511_v0 }
 0x225   :  { %871 = shalt.err (!%p868_p0)
}
 0x226   :  { %s872_s6 = scalar_lea.hbm %s993_s4, 2048 }
 0x227   :  { %p873_p1 = scmp.ne.s32.totalorder %s993_s4, %s872_s6  ;;  %p876_p2 = scmp.lt.u32.totalorder %s872_s6, %s993_s4 }
 0x229   :  { %p878_p3 = pnand %p876_p2, %p873_p1 }
 0x22b   :  { %881 = shalt.err (!%p878_p3)
}
 0x22c   :  { %540 = dma.vmem_to_hbm [thread:$0]  %s535_s26, 2048, %s993_s4, [#allocation5], %s890_s27, %s890_s27, %s891_s28  }
 0x22d   :  { %886 = dma.done.wait [#allocation5], 2048  }
 0x22e   :  { %887 = vsyncadd [#allocation5], 4294965248 }
 0x22f   :  { %544 = vsyncpa [#allocation4], 1 }
 0x230   :  { %545 = vsyncpa [#allocation7], 1 }
 0x231   :  { %546 = vsyncpa [#allocation5], 1 }

</bundles_post_ra>
